<compile_context>
chip_gen: v7x
topology: tpu7x:2x2x1
jax: 0.10.0
libtpu: 0.0.40
codegen_flags: <defaults>
</compile_context>

<pallas_src>
import functools

import jax
import jax.numpy as jnp
from jax.experimental import pallas as pl
from jax.experimental.pallas import tpu as pltpu

N_EMBD = 64
HIDDEN = 4 * N_EMBD          # 256
DROPOUT_P = 0.2
TM_MAX = 2048                # row-tile size for large B*T (multiple of 8)


def _ffn_kernel(seed_ref, x_ref, w1_ref, b1_ref, w2_ref, b2_ref, o_ref,
                *, apply_dropout, keep_threshold, inv_keep, tile_rows, ncols):
    # ---- Linear 1 + ReLU (bf16 MXU operands, f32 accumulate) ----
    h = jnp.dot(x_ref[...].astype(jnp.bfloat16), w1_ref[...],
                preferred_element_type=jnp.float32)
    h = jnp.maximum(h + b1_ref[...], 0.0)

    # ---- Linear 2 ----
    y = jnp.dot(h.astype(jnp.bfloat16), w2_ref[...],
                preferred_element_type=jnp.float32)
    y = y + b2_ref[...]

    if apply_dropout:
        # Stateless counter-based PRNG: unique 32-bit id per element per tile,
        # mixed with the seed through the murmur3 finalizer, then a single
        # uint32 threshold compare (keep prob = 1 - p).
        pid = pl.program_id(0).astype(jnp.uint32)
        r = jax.lax.broadcasted_iota(jnp.int32, y.shape, 0).astype(jnp.uint32)
        c = jax.lax.broadcasted_iota(jnp.int32, y.shape, 1).astype(jnp.uint32)
        seed = seed_ref[0].astype(jnp.uint32)

        idx = (pid * jnp.uint32(tile_rows) + r) * jnp.uint32(ncols) + c
        bits = idx ^ (seed * jnp.uint32(0x9E3779B9))
        bits = bits ^ (bits >> 16)
        bits = bits * jnp.uint32(0x85EBCA6B)
        bits = bits ^ (bits >> 13)
        bits = bits * jnp.uint32(0xC2B2AE35)
        bits = bits ^ (bits >> 16)

        keep = bits >= jnp.uint32(keep_threshold)
        y = jnp.where(keep, y * inv_keep, 0.0)

    o_ref[...] = y.astype(o_ref.dtype)


def feedforward(x, w1, b1, w2, b2, *, seed=0, dropout_p=DROPOUT_P, training=True):
    """x: (B, T, C) float32.  Returns (B, T, C) float32."""
    B, T, C = x.shape
    assert C == w1.shape[0]
    hidden = w1.shape[1]
    rows = B * T
    x2 = x.reshape(rows, C)

    # Row tiling: tm == rows for small inputs (full-dim block is always legal),
    # otherwise a fixed TM_MAX tile with zero-padding on the ragged edge.
    if rows <= TM_MAX:
        tm = rows
        rows_p = rows
    else:
        tm = TM_MAX
        rows_p = pl.cdiv(rows, tm) * tm
        if rows_p != rows:
            x2 = jnp.pad(x2, ((0, rows_p - rows), (0, 0)))
    grid = (rows_p // tm,)

    # Weights shipped / kept resident in bf16 (halves weight HBM traffic; MXU
    # operands are bf16 anyway).  Biases stay f32 for the epilogue math.
    w1_bf = w1.astype(jnp.bfloat16)
    w2_bf = w2.astype(jnp.bfloat16)
    b1_2 = b1.reshape(1, hidden).astype(jnp.float32)
    b2_2 = b2.reshape(1, C).astype(jnp.float32)
    seed_arr = jnp.array([seed], dtype=jnp.int32)

    apply_dropout = bool(training and dropout_p > 0.0)
    keep_threshold = min(int(round(float(dropout_p) * 2.0**32)), 2**32 - 1)
    inv_keep = 1.0 / (1.0 - float(dropout_p)) if apply_dropout else 1.0

    kernel = functools.partial(
        _ffn_kernel,
        apply_dropout=apply_dropout,
        keep_threshold=keep_threshold,
        inv_keep=inv_keep,
        tile_rows=tm,
        ncols=C,
    )

    out = pl.pallas_call(
        kernel,
        out_shape=jax.ShapeDtypeStruct((rows_p, C), jnp.float32),
        grid_spec=pltpu.PrefetchScalarGridSpec(
            num_scalar_prefetch=1,                      # seed lands in SMEM
            grid=grid,
            in_specs=[
                pl.BlockSpec((tm, C),       lambda i, seed: (i, 0)),  # x tile
                pl.BlockSpec((C, hidden),   lambda i, seed: (0, 0)),  # w1 (resident)
                pl.BlockSpec((1, hidden),   lambda i, seed: (0, 0)),  # b1
                pl.BlockSpec((hidden, C),   lambda i, seed: (0, 0)),  # w2 (resident)
                pl.BlockSpec((1, C),        lambda i, seed: (0, 0)),  # b2
            ],
            out_specs=pl.BlockSpec((tm, C), lambda i, seed: (i, 0)),
        ),
        compiler_params=pltpu.CompilerParams(
            dimension_semantics=("parallel",)),         # megacore-shardable rows
    )(seed_arr, x2, w1_bf, b1_2, w2_bf, b2_2)

    if rows_p != rows:
        out = out[:rows]
    return out.reshape(B, T, C)


def init_params(key, n_embd=N_EMBD):
    """Deterministic init matching nn.Linear shapes (stored as (in, out))."""
    k1, k2, k3, k4 = jax.random.split(key, 4)
    bound1 = 1.0 / jnp.sqrt(n_embd)
    bound2 = 1.0 / jnp.sqrt(4 * n_embd)
    w1 = jax.random.uniform(k1, (n_embd, 4 * n_embd), jnp.float32, -bound1, bound1)
    b1 = jax.random.uniform(k2, (4 * n_embd,),        jnp.float32, -bound1, bound1)
    w2 = jax.random.uniform(k3, (4 * n_embd, n_embd), jnp.float32, -bound2, bound2)
    b2 = jax.random.uniform(k4, (n_embd,),            jnp.float32, -bound2, bound2)
    return w1, b1, w2, b2


if __name__ == "__main__":
    key = jax.random.PRNGKey(0)
    kx, kp = jax.random.split(key)

    B, T = 2, 8                       # small batch / seq
    x = jax.random.normal(kx, (B, T, N_EMBD), dtype=jnp.float32)
    w1, b1, w2, b2 = init_params(kp)

    y = feedforward(x, w1, b1, w2, b2, seed=0, training=True)
    jax.block_until_ready(y)
    assert y.shape == (B, T, N_EMBD)
    assert bool(jnp.all(jnp.isfinite(y)))

    # Dropout sanity: roughly p of the elements should be zeroed.
    frac_zero = float(jnp.mean((y == 0.0).astype(jnp.float32)))
    assert 0.05 < frac_zero < 0.45, frac_zero

    # Hot-path sanity check against a pure-JAX f32 reference (dropout disabled).
    # bf16 MXU operands with f32 accumulation -> loose tolerance.
    y_nodrop = feedforward(x, w1, b1, w2, b2, training=False)
    jax.block_until_ready(y_nodrop)
    ref = jnp.maximum(x.reshape(-1, N_EMBD) @ w1 + b1, 0.0) @ w2 + b2
    ref = ref.reshape(B, T, N_EMBD)
    assert jnp.allclose(y_nodrop, ref, atol=2e-2, rtol=2e-2)

    print("KERNEL_OK")
</pallas_src>

<mosaic_0001>
module attributes {stable_mosaic.version = 11 : i64} {
  func.func @_ffn_kernel(%arg0: i32, %arg1: memref<1xi32, #tpu.memory_space<smem>>, %arg2: memref<16x64xf32, #tpu.memory_space<vmem>>, %arg3: memref<64x256xbf16, #tpu.memory_space<vmem>>, %arg4: memref<1x256xf32, #tpu.memory_space<vmem>>, %arg5: memref<256x64xbf16, #tpu.memory_space<vmem>>, %arg6: memref<1x64xf32, #tpu.memory_space<vmem>>, %arg7: memref<16x64xf32, #tpu.memory_space<vmem>>) attributes {dimension_semantics = [#tpu.dimension_semantics<parallel>], iteration_bounds = array<i64: 1>, scalar_prefetch = 1 : i64, scratch_operands = 0 : i64, tpu.core_type = #tpu.core_type<tc>, window_params = [{transform_indices = @transform_0, window_bounds = array<i64: 16, 64>}, {pipeline_mode = #tpu.pipeline_mode<synchronous>, transform_indices = @transform_1, window_bounds = array<i64: 64, 256>}, {pipeline_mode = #tpu.pipeline_mode<synchronous>, transform_indices = @transform_2, window_bounds = array<i64: 1, 256>}, {pipeline_mode = #tpu.pipeline_mode<synchronous>, transform_indices = @transform_3, window_bounds = array<i64: 256, 64>}, {pipeline_mode = #tpu.pipeline_mode<synchronous>, transform_indices = @transform_4, window_bounds = array<i64: 1, 64>}, {transform_indices = @transform_5, window_bounds = array<i64: 16, 64>}]} {
    %c0 = arith.constant 0 : index
    %c0_0 = arith.constant 0 : index
    %0 = vector.load %arg2[%c0, %c0_0] : memref<16x64xf32, #tpu.memory_space<vmem>>, vector<16x64xf32>
    %1 = arith.truncf %0 : vector<16x64xf32> to vector<16x64xbf16>
    %c0_1 = arith.constant 0 : index
    %c0_2 = arith.constant 0 : index
    %2 = vector.load %arg3[%c0_1, %c0_2] : memref<64x256xbf16, #tpu.memory_space<vmem>>, vector<64x256xbf16>
    %cst = arith.constant dense<0.000000e+00> : vector<16x256xf32>
    %3 = tpu.matmul %1, %2, %cst {dimension_numbers = #tpu.dot_dimension_numbers<[1], [0], [0], [1], [0, 0, 1, 1], [], []>} : vector<16x64xbf16>, vector<64x256xbf16>, vector<16x256xf32> -> vector<16x256xf32>
    %c0_3 = arith.constant 0 : index
    %c0_4 = arith.constant 0 : index
    %4 = vector.load %arg4[%c0_3, %c0_4] : memref<1x256xf32, #tpu.memory_space<vmem>>, vector<1x256xf32>
    %5 = vector.broadcast %4 : vector<1x256xf32> to vector<16x256xf32>
    %6 = arith.addf %3, %5 : vector<16x256xf32>
    %cst_5 = arith.constant 0.000000e+00 : f32
    %7 = vector.broadcast %cst_5 : f32 to vector<16x256xf32>
    %8 = arith.maximumf %6, %7 : vector<16x256xf32>
    %9 = arith.truncf %8 : vector<16x256xf32> to vector<16x256xbf16>
    %c0_6 = arith.constant 0 : index
    %c0_7 = arith.constant 0 : index
    %10 = vector.load %arg5[%c0_6, %c0_7] : memref<256x64xbf16, #tpu.memory_space<vmem>>, vector<256x64xbf16>
    %cst_8 = arith.constant dense<0.000000e+00> : vector<16x64xf32>
    %11 = tpu.matmul %9, %10, %cst_8 {dimension_numbers = #tpu.dot_dimension_numbers<[1], [0], [0], [1], [0, 0, 1, 1], [], []>} : vector<16x256xbf16>, vector<256x64xbf16>, vector<16x64xf32> -> vector<16x64xf32>
    %c0_9 = arith.constant 0 : index
    %c0_10 = arith.constant 0 : index
    %12 = vector.load %arg6[%c0_9, %c0_10] : memref<1x64xf32, #tpu.memory_space<vmem>>, vector<1x64xf32>
    %13 = vector.broadcast %12 : vector<1x64xf32> to vector<16x64xf32>
    %14 = arith.addf %11, %13 : vector<16x64xf32>
    %15 = tpu.iota {dimensions = array<i32: 0>} : vector<16x64xi32>
    %16 = tpu.iota {dimensions = array<i32: 1>} : vector<16x64xi32>
    %c0_11 = arith.constant 0 : index
    %17 = memref.load %arg1[%c0_11] : memref<1xi32, #tpu.memory_space<smem>>
    %c16_i32 = arith.constant 16 : i32
    %18 = arith.muli %arg0, %c16_i32 : i32
    %19 = vector.broadcast %18 : i32 to vector<16x64xi32>
    %20 = arith.addi %19, %15 : vector<16x64xi32>
    %c64_i32 = arith.constant 64 : i32
    %21 = vector.broadcast %c64_i32 : i32 to vector<16x64xi32>
    %22 = arith.muli %20, %21 : vector<16x64xi32>
    %23 = arith.addi %22, %16 : vector<16x64xi32>
    %c-1640531527_i32 = arith.constant -1640531527 : i32
    %24 = arith.muli %17, %c-1640531527_i32 : i32
    %25 = vector.broadcast %24 : i32 to vector<16x64xi32>
    %26 = arith.xori %23, %25 : vector<16x64xi32>
    %c16_i32_12 = arith.constant 16 : i32
    %27 = vector.broadcast %c16_i32_12 : i32 to vector<16x64xi32>
    %28 = arith.shrui %26, %27 : vector<16x64xi32>
    %29 = arith.xori %26, %28 : vector<16x64xi32>
    %c-2048144789_i32 = arith.constant -2048144789 : i32
    %30 = vector.broadcast %c-2048144789_i32 : i32 to vector<16x64xi32>
    %31 = arith.muli %29, %30 : vector<16x64xi32>
    %c13_i32 = arith.constant 13 : i32
    %32 = vector.broadcast %c13_i32 : i32 to vector<16x64xi32>
    %33 = arith.shrui %31, %32 : vector<16x64xi32>
    %34 = arith.xori %31, %33 : vector<16x64xi32>
    %c-1028477387_i32 = arith.constant -1028477387 : i32
    %35 = vector.broadcast %c-1028477387_i32 : i32 to vector<16x64xi32>
    %36 = arith.muli %34, %35 : vector<16x64xi32>
    %c16_i32_13 = arith.constant 16 : i32
    %37 = vector.broadcast %c16_i32_13 : i32 to vector<16x64xi32>
    %38 = arith.shrui %36, %37 : vector<16x64xi32>
    %39 = arith.xori %36, %38 : vector<16x64xi32>
    %c858993459_i32 = arith.constant 858993459 : i32
    %40 = vector.broadcast %c858993459_i32 : i32 to vector<16x64xi32>
    %41 = arith.cmpi uge, %39, %40 : vector<16x64xi32>
    %cst_14 = arith.constant 1.250000e+00 : f32
    %42 = vector.broadcast %cst_14 : f32 to vector<16x64xf32>
    %43 = arith.mulf %14, %42 : vector<16x64xf32>
    %cst_15 = arith.constant 0.000000e+00 : f32
    %44 = vector.broadcast %cst_15 : f32 to vector<16x64xf32>
    %45 = arith.select %41, %43, %44 : vector<16x64xi1>, vector<16x64xf32>
    %c0_16 = arith.constant 0 : index
    %c0_17 = arith.constant 0 : index
    %46 = vector.load %arg7[%c0_16, %c0_17] : memref<16x64xf32, #tpu.memory_space<vmem>>, vector<16x64xf32>
    tpu.vector_store %arg7[%c0_16, %c0_17], %45 {strides = array<i32>} : memref<16x64xf32, #tpu.memory_space<vmem>>, vector<16x64xf32>,
    return
  }
  func.func @transform_0(%arg0: i32, %arg1: memref<1xi32, #tpu.memory_space<smem>>) -> (i32, i32) {
    %c0_i32 = arith.constant 0 : i32
    %c0_i32_0 = arith.constant 0 : i32
    return %arg0, %c0_i32 : i32, i32
  }
  func.func @transform_1(%arg0: i32, %arg1: memref<1xi32, #tpu.memory_space<smem>>) -> (i32, i32) {
    %c0_i32 = arith.constant 0 : i32
    %c0_i32_0 = arith.constant 0 : i32
    %c0_i32_1 = arith.constant 0 : i32
    return %c0_i32, %c0_i32_0 : i32, i32
  }
  func.func @transform_2(%arg0: i32, %arg1: memref<1xi32, #tpu.memory_space<smem>>) -> (i32, i32) {
    %c0_i32 = arith.constant 0 : i32
    %c0_i32_0 = arith.constant 0 : i32
    %c0_i32_1 = arith.constant 0 : i32
    return %c0_i32, %c0_i32_0 : i32, i32
  }
  func.func @transform_3(%arg0: i32, %arg1: memref<1xi32, #tpu.memory_space<smem>>) -> (i32, i32) {
    %c0_i32 = arith.constant 0 : i32
    %c0_i32_0 = arith.constant 0 : i32
    %c0_i32_1 = arith.constant 0 : i32
    return %c0_i32, %c0_i32_0 : i32, i32
  }
  func.func @transform_4(%arg0: i32, %arg1: memref<1xi32, #tpu.memory_space<smem>>) -> (i32, i32) {
    %c0_i32 = arith.constant 0 : i32
    %c0_i32_0 = arith.constant 0 : i32
    %c0_i32_1 = arith.constant 0 : i32
    return %c0_i32, %c0_i32_0 : i32, i32
  }
  func.func @transform_5(%arg0: i32, %arg1: memref<1xi32, #tpu.memory_space<smem>>) -> (i32, i32) {
    %c0_i32 = arith.constant 0 : i32
    %c0_i32_0 = arith.constant 0 : i32
    return %arg0, %c0_i32 : i32, i32
  }
}

</mosaic_0001>

<bundles_post_ra>
// kernel: tpu_custom_call.1
= control target key start
LH: loop header
LB: loop body
LE: loop exit
PB: predicated region body
PF: predicated region fallthrough
CT: control target
= control target key end

     0   :  { %v478_v2 = vmov 0   ;;  %vm87_vm0 = vcmask 523264   ;;  %s619_s0 = inlined_call_operand.<no memory space> [shape: s32[1], index: 0, kind: input, shape index: {}]   ;;  %s620_s1 = inlined_call_operand.vmem [shape: f32[16,64], index: 1, kind: input, shape index: {}]   ;;  %s621_s2 = inlined_call_operand.vmem [shape: bf16[64,256], index: 2, kind: input, shape index: {}]   ;;  %s622_s3 = inlined_call_operand.vmem [shape: f32[1,256], index: 3, kind: input, shape index: {}]   ;;  %s623_s4 = inlined_call_operand.vmem [shape: bf16[256,64], index: 4, kind: input, shape index: {}]   ;;  %s624_s5 = inlined_call_operand.vmem [shape: f32[1,64], index: 5, kind: input, shape index: {}]   ;;  %s625_s6 = inlined_call_operand.hbm [shape: f32[16,64], index: 6, kind: output, shape index: {}]  }
   0x1   :  { %v426_v0 = vld [vmem:[%s621_s2 + $0x4] ss:$8 sps:$4 sm:$0xff]   ;;  %v428_v1 = vld [vmem:[%s621_s2] ss:$8 sps:$4 sm:$0xff]   ;;  %123 = vmatprep.mubr.bf16.mxu0 %v478_v2  ;;  %v429_v3 = vld [vmem:[%s621_s2 + $0x14] ss:$8 sps:$4 sm:$0xff]  }
   0x2   :  { %91 = vmatprep.subr.bf16.mxu0 %v426_v0  ;;  %v431_v4 = vld [vmem:[%s621_s2 + $0x10] ss:$8 sps:$4 sm:$0xff]   ;;  %v432_v5 = vld [vmem:[%s621_s2 + $0x24] ss:$8 sps:$4 sm:$0xff]   ;;  %v434_v6 = vld [vmem:[%s621_s2 + $0x20] ss:$8 sps:$4 sm:$0xff]  }
   0x3   :  { %92 = vmatpush1.bf16.msra.mxu0 %v428_v1  ;;  %v435_v7 = vld [vmem:[%s621_s2 + $0x34] ss:$8 sps:$4 sm:$0xff]   ;;  %v438_v8 = vld [vmem:[%s623_s4 + $0x40] sm:$0xff]   ;;  %v440_v10 = vld [vmem:[%s623_s4 + $0x48] sm:$0xff]  }
   0x4   :  { %93 = vmatprep.subr.bf16.mxu0 %v429_v3  ;;  %v439_v9 = vld [vmem:[%s623_s4] sm:$0xff]   ;;  %400 = vmatprep.subr.bf16.mxu1 %v438_v8  ;;  %v437_v11 = vld [vmem:[%s621_s2 + $0x30] ss:$8 sps:$4 sm:$0xff]   ;;  %v441_v13 = vld [vmem:[%s623_s4 + $0x8] sm:$0xff]  }
   0x5   :  { %v24_v12 = vld [vmem:[%s620_s1] sm:$0xff]  ;;  %401 = vmatpush3.bf16.msra.mxu1 %v439_v9  ;;  %v442_v14 = vld [vmem:[%s623_s4 + $0x50] sm:$0xff]   ;;  %v25_v15 = vld [vmem:[%s620_s1 + $0x8] sm:$0xff] }
   0x6   :  { %402 = vmatprep.subr.bf16.mxu1 %v440_v10  ;;  %v443_v16 = vld [vmem:[%s623_s4 + $0x10] sm:$0xff]   ;;  %v26_v17 = vpack.c.bf16 %v25_v15, %v24_v12  ;;  %v444_v18 = vld [vmem:[%s623_s4 + $0x58] sm:$0xff]   ;;  %v446_v20 = vld [vmem:[%s623_s4 + $0x60] sm:$0xff]  }
   0x7   :  { %94 = vmatpush1.bf16.msra.mxu0 %v431_v4  ;;  %v445_v19 = vld [vmem:[%s623_s4 + $0x18] sm:$0xff]  }
   0x8   :  { %95 = vmatprep.subr.bf16.mxu0 %v432_v5 }
   0x9   :  { %403 = vmatpush3.bf16.msra.mxu1 %v441_v13 }
   0xa   :  { %404 = vmatprep.subr.bf16.mxu1 %v442_v14 }
   0xb   :  { %96 = vmatpush1.bf16.msra.mxu0 %v434_v6 }
   0xc   :  { %97 = vmatprep.subr.bf16.mxu0 %v435_v7 }
   0xd   :  { %405 = vmatpush3.bf16.msra.mxu1 %v443_v16 }
   0xe   :  { %406 = vmatprep.subr.bf16.mxu1 %v444_v18 }
   0xf   :  { %98 = vmatpush1.bf16.msra.mxu0 %v437_v11 }
  0x12   :  { %382 = vmatmul.mubr.msk.bf16.vlgmr.msra.gmra.mrb[0].mxu0 %vm87_vm0, %v26_v17 }
  0x13   :  { %12 = vsyncpa [#allocation5], 0  ;;  %407 = vmatpush3.bf16.msra.mxu1 %v445_v19  ;;  %v447_v21 = vld [vmem:[%s623_s4 + $0x20] sm:$0xff]   ;;  %v448_v22 = vld [vmem:[%s623_s4 + $0x68] sm:$0xff]   ;;  %v37_v28 = vlaneseq  ;;  %s330_s25 = smul.u32 2654435769, %s619_s0 }
  0x14   :  { %408 = vmatprep.subr.bf16.mxu1 %v446_v20  ;;  %v449_v23 = vld [vmem:[%s623_s4 + $0x28] sm:$0xff]   ;;  %v450_v24 = vld [vmem:[%s623_s4 + $0x70] sm:$0xff]   ;;  %v452_v26 = vld [vmem:[%s623_s4 + $0x78] sm:$0xff]   ;;  %s479_s2 = smov [#allocation4]  }
  0x15   :  { %v451_v25 = vld [vmem:[%s623_s4 + $0x30] sm:$0xff]   ;;  %v453_v27 = vld [vmem:[%s623_s4 + $0x38] sm:$0xff]   ;;  %v38_v29 = vshrl.u32 %v37_v28, 7  ;;  %v35_v31 = vld [vmem:[%s622_s3] sm:$0x3]  ;;  %v320_v50 = vand.u32 127, %v37_v28  ;;  %v331_v54 = vstv %s330_s25 }
  0x16   :  { %v383_v9 = vld [vmem:[%s624_s5] ss:$0 sm:$0xff]  ;;  %s363_s27 = sshll.u32 %s479_s2, 4  ;;  %s364_s27 = int_to_ptr.vmem [resolvable:$true] %s363_s27 }
  0x17   :  { %409 = vmatpush3.bf16.msra.mxu1 %v447_v21  ;;  %v39_v30 = vsub.s32 0, %v38_v29  ;;  %v43_v32 = vsub.s32 1, %v38_v29  ;;  %v318_v49 = vadd.s32 8, %v38_v29  ;;  %v326_v51 = vmul.u32 64, %v38_v29  ;;  %s454_s5 = scalar_lea.vmem %s364_s27, 256  ;;  %p459_p1 = scmp.lt.s32.totalorder %s364_s27, %s364_s27 }
  0x18   :  { %410 = vmatprep.subr.bf16.mxu1 %v448_v22  ;;  %p455_p0 = scmp.ne.s32.totalorder %s364_s27, %s454_s5  ;;  %p460_p2 = scmp.lt.s32.totalorder %s454_s5, %s454_s5 }
  0x19   :  { %v40_v33 = vrot.slane %v35_v31, %v39_v30  ;;  %v44_v34 = vrot.slane %v35_v31, %v43_v32  ;;  %v327_v52 = vmul.u32 64, %v318_v49  ;;  %v328_v53 = vadd.s32 %v326_v51, %v320_v50 }
  0x1a   :  { %p461_p3 = por %p460_p2, %p459_p1 }
  0x1b   :  { %411 = vmatpush3.bf16.msra.mxu1 %v449_v23  ;;  %v329_v55 = vadd.s32 %v327_v52, %v320_v50  ;;  %v332_v56 = vxor.u32 %v331_v54, %v328_v53 }
  0x1c   :  { %412 = vmatprep.subr.bf16.mxu1 %v450_v24  ;;  %p462_p4 = pnand %p461_p3, %p455_p0 }
  0x1d   :  { %v333_v57 = vxor.u32 %v331_v54, %v329_v55  ;;  %v334_v58 = vshrl.u32 %v332_v56, 16 }
  0x1f   :  { %413 = vmatpush3.bf16.msra.mxu1 %v451_v25  ;;  %v335_v59 = vshrl.u32 %v333_v57, 16  ;;  %v336_v60 = vxor.u32 %v334_v58, %v332_v56 }
  0x20   :  { %414 = vmatprep.subr.bf16.mxu1 %v452_v26 }
  0x21   :  { %v337_v61 = vxor.u32 %v335_v59, %v333_v57  ;;  %v338_v62 = vmul.u32 2246822507, %v336_v60 }
  0x23   :  { %415 = vmatpush3.bf16.msra.mxu1 %v453_v27  ;;  %v339_v63 = vmul.u32 2246822507, %v337_v61  ;;  %v340_v0 = vshrl.u32 %v338_v62, 13 }
  0x25   :  { %v341_v1 = vshrl.u32 %v339_v63, 13  ;;  %v342_v2 = vxor.u32 %v340_v0, %v338_v62 }
  0x27   :  { %v343_v3 = vxor.u32 %v341_v1, %v339_v63  ;;  %v344_v4 = vmul.u32 3266489909, %v342_v2 }
  0x29   :  { %v345_v5 = vmul.u32 3266489909, %v343_v3  ;;  %v346_v6 = vshrl.u32 %v344_v4, 16 }
  0x2b   :  { %v347_v7 = vshrl.u32 %v345_v5, 16  ;;  %v348_v11 = vxor.u32 %v346_v6, %v344_v4 }
  0x2d   :  { %v349_v15 = vxor.u32 %v347_v7, %v345_v5  ;;  %vm350_vm1 = vcmp.ge.u32.totalorder %v348_v11, 858993459 }
  0x2f   :  { %vm351_vm2 = vcmp.ge.u32.totalorder %v349_v15, 858993459 }
  0xe5   :  { %v125_v35 = vpop.f32.mrb[0].mxu0 }
  0xe6   :  { %v126_v36 = vadd.f32 %v125_v35, %v40_v33  ;;  %v127_v37 = vpop.f32.mrb[1].mxu0 }
  0xe7   :  { %v128_v38 = vadd.f32 %v127_v37, %v44_v34  ;;  %v129_v39 = vpop.f32.mrb[2].mxu0 }
  0xe8   :  { %v130_v40 = vadd.f32 %v129_v39, %v40_v33  ;;  %v131_v41 = vpop.f32.mrb[3].mxu0  ;;  %v134_v43 = vmax.f32 %v126_v36, 0.0 }
  0xe9   :  { %v132_v42 = vadd.f32 %v131_v41, %v44_v34  ;;  %v135_v45 = vmax.f32 %v128_v38, 0.0 }
  0xea   :  { %v136_v44 = vmax.f32 %v130_v40, 0.0 }
  0xeb   :  { %v137_v46 = vmax.f32 %v132_v42, 0.0 }
  0xec   :  { %v138_v47 = vpack.c.bf16 %v136_v44, %v134_v43 }
  0xed   :  { %v139_v48 = vpack.c.bf16 %v137_v46, %v135_v45 }
  0xef   :  { %307 = vmatprep.mubr.bf16.mxu1 %v139_v48 }
  0xf0   :  { %308 = vmatmul.mubr.bf16.vlgmr.msra.gmra.mrb[0].mxu1 %v138_v47 }
 0x1c3   :  { %v416_v8 = vpop.f32.mrb[0].mxu1 }
 0x1c4   :  { %v417_v10 = vpop.f32.mrb[1].mxu1 }
 0x1c5   :  { %v418_v12 = vadd.f32 %v417_v10, %v416_v8  ;;  %v419_v13 = vpop.f32.mrb[2].mxu1 }
 0x1c6   :  { %v420_v14 = vpop.f32.mrb[3].mxu1 }
 0x1c7   :  { %v310_v16 = vadd.f32 %v418_v12, %v383_v9  ;;  %v421_v17 = vadd.f32 %v420_v14, %v419_v13 }
 0x1c9   :  { %v352_v18 = vmul.f32 1.25, %v310_v16  ;;  %v313_v19 = vadd.f32 %v421_v17, %v383_v9 }
 0x1cb   :  { %v354_v20 = vsel %vm350_vm1, %v352_v18, 0.0  ;;  %v353_v21 = vmul.f32 1.25, %v313_v19 }
 0x1cc   :  { %356 = vst.msk [vmem:[#allocation4] sm:$0xff] %vm87_vm0, %v354_v20 }
 0x1cd   :  { %v355_v22 = vsel %vm351_vm2, %v353_v21, 0.0 }
 0x1ce   :  { %357 = vst.msk [vmem:[#allocation4 + $0x8] sm:$0xff] %vm87_vm0, %v355_v22 }
 0x1cf   :  { %465 = shalt.err (!%p462_p4)
}
 0x1d0   :  { %s466_s30 = scalar_lea.hbm %s625_s6, 256 }
 0x1d1   :  { %p467_p5 = scmp.ne.s32.totalorder %s625_s6, %s466_s30  ;;  %p470_p6 = scmp.lt.u32.totalorder %s466_s30, %s625_s6 }
 0x1d3   :  { %p472_p7 = pnand %p470_p6, %p467_p5 }
 0x1d5   :  { %475 = shalt.err (!%p472_p7)
}
 0x1d6   :  { %s480_s10 = smov 128   ;;  %s481_s11 = smov 8  }
 0x1d7   :  { %369 = dma.vmem_to_hbm [thread:$0]  %s364_s27, 256, %s625_s6, [#allocation5], %s480_s10, %s480_s10, %s481_s11  }
 0x1d8   :  { %476 = dma.done.wait [#allocation5], 256  }
 0x1d9   :  { %477 = vsyncadd [#allocation5], 4294967040 }
 0x1da   :  { %373 = vsyncpa [#allocation5], 1 }

</bundles_post_ra>
